<compile_context>
chip_gen: v7x
topology: tpu7x:2x2x1
jax: 0.10.0
libtpu: 0.0.40
codegen_flags: <defaults>
</compile_context>

<pallas_src>
import jax
import jax.numpy as jnp
from jax.experimental import pallas as pl
from jax.experimental.pallas import tpu as pltpu

SUBLANE = 8  # f32 sublane count


def _round_up(n, m):
    return ((n + m - 1) // m) * m


# ---------------------------------------------------------------------------
# Kernel: one batch tile, full fused MLP.
# ---------------------------------------------------------------------------
def clmodel_kernel(x_ref, w1_ref, b1_ref, w2_ref, b2_ref, w3t_ref, b3_ref, o_ref):
    # fc1 + ReLU   (MXU matmul, f32)
    h1 = jnp.dot(x_ref[...], w1_ref[...], preferred_element_type=jnp.float32)
    h1 = jnp.maximum(h1 + b1_ref[...], 0.0)
    # fc2 + ReLU
    h2 = jnp.dot(h1, w2_ref[...], preferred_element_type=jnp.float32)
    h2 = jnp.maximum(h2 + b2_ref[...], 0.0)
    # fc3 (output width 1): broadcast-multiply + lane reduction instead of an
    # N=1 matmul; XLU reduce is free under the memory bound.
    z = jnp.sum(h2 * w3t_ref[...], axis=-1, keepdims=True) + b3_ref[...]
    # Sigmoid (EUP) and narrow [tb, 1] store.
    o_ref[...] = jax.nn.sigmoid(z).astype(o_ref.dtype)


# ---------------------------------------------------------------------------
# Wrapper
# ---------------------------------------------------------------------------
def clmodel_forward(x, params, *, tb=2048):
    """x: [B, input_size] f32.  params: raw f32 Linear params ([in, out] weight
    layout, [1, out] biases).  Returns [B, 1] f32 (same as the PyTorch model)."""
    w1, b1 = params["w1"], params["b1"]
    w2, b2 = params["w2"], params["b2"]
    w3, b3 = params["w3"], params["b3"]

    B, F = x.shape
    H1 = w1.shape[1]
    H2 = w2.shape[1]
    O = w3.shape[1]  # == 1

    # fc3 weight as a [1, H2] row so the kernel can do multiply + lane-reduce.
    w3t = w3.reshape(1, H2)
    b3 = b3.reshape(1, O)

    # Batch tile: multiple of 8 sublanes; ragged last block handled by Pallas.
    tb = min(tb, _round_up(B, SUBLANE))
    grid = (pl.cdiv(B, tb),)

    # Weights/biases: full-array blocks with constant index_map -> VMEM-resident.
    const = lambda a: pl.BlockSpec(a.shape, lambda i: (0, 0))

    param_bytes = sum(int(a.size) * a.dtype.itemsize
                      for a in (w1, b1, w2, b2, w3t, b3))
    cost = pl.CostEstimate(
        flops=2 * B * (F * H1 + H1 * H2 + H2 * O),
        transcendentals=B * O,
        bytes_accessed=int(x.size) * x.dtype.itemsize + B * O * 4 + param_bytes,
    )

    return pl.pallas_call(
        clmodel_kernel,
        out_shape=jax.ShapeDtypeStruct((B, O), jnp.float32),
        grid=grid,
        in_specs=[
            pl.BlockSpec((tb, F), lambda i: (i, 0)),   # x: batch-tiled
            const(w1), const(b1),
            const(w2), const(b2),
            const(w3t), const(b3),
        ],
        out_specs=pl.BlockSpec((tb, O), lambda i: (i, 0)),
        compiler_params=pltpu.CompilerParams(
            dimension_semantics=("parallel",),         # shard tiles on v7x's 2 TCs
        ),
        cost_estimate=cost,
    )(x, w1, b1, w2, b2, w3t, b3)


# ---------------------------------------------------------------------------
# Synthetic init (uniform, roughly nn.Linear scale); [in, out] weight layout.
# ---------------------------------------------------------------------------
def init_params(key, input_size, hidden_size1, hidden_size2):
    ks = jax.random.split(key, 6)

    def lin(kw, kb, fan_in, fan_out):
        bound = 1.0 / jnp.sqrt(fan_in)
        w = jax.random.uniform(kw, (fan_in, fan_out), jnp.float32, -bound, bound)
        b = jax.random.uniform(kb, (1, fan_out), jnp.float32, -bound, bound)
        return w, b

    w1, b1 = lin(ks[0], ks[1], input_size, hidden_size1)
    w2, b2 = lin(ks[2], ks[3], hidden_size1, hidden_size2)
    w3, b3 = lin(ks[4], ks[5], hidden_size2, 1)
    return {"w1": w1, "b1": b1, "w2": w2, "b2": b2, "w3": w3, "b3": b3}


if __name__ == "__main__":
    key = jax.random.PRNGKey(0)
    k_x, k_p = jax.random.split(key)

    B, input_size, hidden_size1, hidden_size2 = 8, 32, 64, 32
    x = jax.random.normal(k_x, (B, input_size), dtype=jnp.float32)
    params = init_params(k_p, input_size, hidden_size1, hidden_size2)

    out = clmodel_forward(x, params)
    out = jax.block_until_ready(out)
    assert out.shape == (B, 1)

    # Full-f32 reference (original PyTorch semantics).
    def ref_f32(x, p):
        h = jnp.maximum(x @ p["w1"] + p["b1"], 0.0)
        h = jnp.maximum(h @ p["w2"] + p["b2"], 0.0)
        return jax.nn.sigmoid(h @ p["w3"] + p["b3"])

    r = ref_f32(x, params)
    assert jnp.allclose(out, r, atol=2e-2, rtol=2e-2), "mismatch vs f32 reference"

    print("KERNEL_OK")
</pallas_src>

<mosaic_0001>
module attributes {stable_mosaic.version = 11 : i64} {
  func.func @clmodel_kernel(%arg0: i32, %arg1: memref<8x32xf32, #tpu.memory_space<vmem>>, %arg2: memref<32x64xf32, #tpu.memory_space<vmem>>, %arg3: memref<1x64xf32, #tpu.memory_space<vmem>>, %arg4: memref<64x32xf32, #tpu.memory_space<vmem>>, %arg5: memref<1x32xf32, #tpu.memory_space<vmem>>, %arg6: memref<1x32xf32, #tpu.memory_space<vmem>>, %arg7: memref<1x1xf32, #tpu.memory_space<vmem>>, %arg8: memref<8x1xf32, #tpu.memory_space<vmem>>) attributes {dimension_semantics = [#tpu.dimension_semantics<parallel>], iteration_bounds = array<i64: 1>, scalar_prefetch = 0 : i64, scratch_operands = 0 : i64, tpu.core_type = #tpu.core_type<tc>, window_params = [{transform_indices = @transform_0, window_bounds = array<i64: 8, 32>}, {pipeline_mode = #tpu.pipeline_mode<synchronous>, transform_indices = @transform_1, window_bounds = array<i64: 32, 64>}, {pipeline_mode = #tpu.pipeline_mode<synchronous>, transform_indices = @transform_2, window_bounds = array<i64: 1, 64>}, {pipeline_mode = #tpu.pipeline_mode<synchronous>, transform_indices = @transform_3, window_bounds = array<i64: 64, 32>}, {pipeline_mode = #tpu.pipeline_mode<synchronous>, transform_indices = @transform_4, window_bounds = array<i64: 1, 32>}, {pipeline_mode = #tpu.pipeline_mode<synchronous>, transform_indices = @transform_5, window_bounds = array<i64: 1, 32>}, {pipeline_mode = #tpu.pipeline_mode<synchronous>, transform_indices = @transform_6, window_bounds = array<i64: 1, 1>}, {transform_indices = @transform_7, window_bounds = array<i64: 8, 1>}]} {
    %c0 = arith.constant 0 : index
    %c0_0 = arith.constant 0 : index
    %0 = vector.load %arg1[%c0, %c0_0] : memref<8x32xf32, #tpu.memory_space<vmem>>, vector<8x32xf32>
    %c0_1 = arith.constant 0 : index
    %c0_2 = arith.constant 0 : index
    %1 = vector.load %arg2[%c0_1, %c0_2] : memref<32x64xf32, #tpu.memory_space<vmem>>, vector<32x64xf32>
    %cst = arith.constant dense<0.000000e+00> : vector<8x64xf32>
    %2 = tpu.matmul %0, %1, %cst {dimension_numbers = #tpu.dot_dimension_numbers<[1], [0], [0], [1], [0, 0, 1, 1], [], []>} : vector<8x32xf32>, vector<32x64xf32>, vector<8x64xf32> -> vector<8x64xf32>
    %c0_3 = arith.constant 0 : index
    %c0_4 = arith.constant 0 : index
    %3 = vector.load %arg3[%c0_3, %c0_4] : memref<1x64xf32, #tpu.memory_space<vmem>>, vector<1x64xf32>
    %4 = vector.broadcast %3 : vector<1x64xf32> to vector<8x64xf32>
    %5 = arith.addf %2, %4 : vector<8x64xf32>
    %cst_5 = arith.constant 0.000000e+00 : f32
    %6 = vector.broadcast %cst_5 : f32 to vector<8x64xf32>
    %7 = arith.maximumf %5, %6 : vector<8x64xf32>
    %c0_6 = arith.constant 0 : index
    %c0_7 = arith.constant 0 : index
    %8 = vector.load %arg4[%c0_6, %c0_7] : memref<64x32xf32, #tpu.memory_space<vmem>>, vector<64x32xf32>
    %cst_8 = arith.constant dense<0.000000e+00> : vector<8x32xf32>
    %9 = tpu.matmul %7, %8, %cst_8 {dimension_numbers = #tpu.dot_dimension_numbers<[1], [0], [0], [1], [0, 0, 1, 1], [], []>} : vector<8x64xf32>, vector<64x32xf32>, vector<8x32xf32> -> vector<8x32xf32>
    %c0_9 = arith.constant 0 : index
    %c0_10 = arith.constant 0 : index
    %10 = vector.load %arg5[%c0_9, %c0_10] : memref<1x32xf32, #tpu.memory_space<vmem>>, vector<1x32xf32>
    %11 = vector.broadcast %10 : vector<1x32xf32> to vector<8x32xf32>
    %12 = arith.addf %9, %11 : vector<8x32xf32>
    %cst_11 = arith.constant 0.000000e+00 : f32
    %13 = vector.broadcast %cst_11 : f32 to vector<8x32xf32>
    %14 = arith.maximumf %12, %13 : vector<8x32xf32>
    %c0_12 = arith.constant 0 : index
    %c0_13 = arith.constant 0 : index
    %15 = vector.load %arg6[%c0_12, %c0_13] : memref<1x32xf32, #tpu.memory_space<vmem>>, vector<1x32xf32>
    %16 = vector.broadcast %15 : vector<1x32xf32> to vector<8x32xf32>
    %17 = arith.mulf %14, %16 : vector<8x32xf32>
    %cst_14 = arith.constant dense<0.000000e+00> : vector<8xf32>
    %18 = vector.multi_reduction <add>, %17, %cst_14 [1] : vector<8x32xf32> to vector<8xf32>
    %19 = vector.shape_cast %18 : vector<8xf32> to vector<8x1xf32>
    %c0_15 = arith.constant 0 : index
    %c0_16 = arith.constant 0 : index
    %20 = vector.load %arg7[%c0_15, %c0_16] : memref<1x1xf32, #tpu.memory_space<vmem>>, vector<1x1xf32>
    %21 = vector.broadcast %20 : vector<1x1xf32> to vector<8x1xf32>
    %22 = arith.addf %19, %21 : vector<8x1xf32>
    %23 = arith.negf %22 : vector<8x1xf32>
    %24 = math.exp %23 : vector<8x1xf32>
    %cst_17 = arith.constant 1.000000e+00 : f32
    %25 = vector.broadcast %cst_17 : f32 to vector<8x1xf32>
    %26 = arith.addf %25, %24 : vector<8x1xf32>
    %27 = arith.divf %25, %26 : vector<8x1xf32>
    %c0_18 = arith.constant 0 : index
    %c0_19 = arith.constant 0 : index
    %28 = vector.load %arg8[%c0_18, %c0_19] : memref<8x1xf32, #tpu.memory_space<vmem>>, vector<8x1xf32>
    tpu.vector_store %arg8[%c0_18, %c0_19], %27 {strides = array<i32>} : memref<8x1xf32, #tpu.memory_space<vmem>>, vector<8x1xf32>,
    return
  }
  func.func @transform_0(%arg0: i32) -> (i32, i32) {
    %c0_i32 = arith.constant 0 : i32
    %c0_i32_0 = arith.constant 0 : i32
    return %arg0, %c0_i32 : i32, i32
  }
  func.func @transform_1(%arg0: i32) -> (i32, i32) {
    %c0_i32 = arith.constant 0 : i32
    %c0_i32_0 = arith.constant 0 : i32
    %c0_i32_1 = arith.constant 0 : i32
    return %c0_i32, %c0_i32_0 : i32, i32
  }
  func.func @transform_2(%arg0: i32) -> (i32, i32) {
    %c0_i32 = arith.constant 0 : i32
    %c0_i32_0 = arith.constant 0 : i32
    %c0_i32_1 = arith.constant 0 : i32
    return %c0_i32, %c0_i32_0 : i32, i32
  }
  func.func @transform_3(%arg0: i32) -> (i32, i32) {
    %c0_i32 = arith.constant 0 : i32
    %c0_i32_0 = arith.constant 0 : i32
    %c0_i32_1 = arith.constant 0 : i32
    return %c0_i32, %c0_i32_0 : i32, i32
  }
  func.func @transform_4(%arg0: i32) -> (i32, i32) {
    %c0_i32 = arith.constant 0 : i32
    %c0_i32_0 = arith.constant 0 : i32
    %c0_i32_1 = arith.constant 0 : i32
    return %c0_i32, %c0_i32_0 : i32, i32
  }
  func.func @transform_5(%arg0: i32) -> (i32, i32) {
    %c0_i32 = arith.constant 0 : i32
    %c0_i32_0 = arith.constant 0 : i32
    %c0_i32_1 = arith.constant 0 : i32
    return %c0_i32, %c0_i32_0 : i32, i32
  }
  func.func @transform_6(%arg0: i32) -> (i32, i32) {
    %c0_i32 = arith.constant 0 : i32
    %c0_i32_0 = arith.constant 0 : i32
    %c0_i32_1 = arith.constant 0 : i32
    return %c0_i32, %c0_i32_0 : i32, i32
  }
  func.func @transform_7(%arg0: i32) -> (i32, i32) {
    %c0_i32 = arith.constant 0 : i32
    %c0_i32_0 = arith.constant 0 : i32
    return %arg0, %c0_i32 : i32, i32
  }
}

</mosaic_0001>

<bundles_post_ra>
// kernel: tpu_custom_call.1
= control target key start
LH: loop header
LB: loop body
LE: loop exit
PB: predicated region body
PF: predicated region fallthrough
CT: control target
= control target key end

     0   :  { %v312_v0 = vmov 0.0|0.0   ;;  %vm313_vm0 = vmmov 0   ;;  %v314_v4 = vmov 0.0   ;;  %vm40_vm1 = vcmask 261120   ;;  %s411_s1 = inlined_call_operand.vmem [shape: f32[32,64], index: 1, kind: input, shape index: {}]   ;;  %s412_s3 = inlined_call_operand.vmem [shape: f32[64,32], index: 3, kind: input, shape index: {}]   ;;  %s413_s0 = inlined_call_operand.vmem [shape: f32[8,32], index: 0, kind: input, shape index: {}]   ;;  %s414_s2 = inlined_call_operand.vmem [shape: f32[1,64], index: 2, kind: input, shape index: {}]   ;;  %s415_s6 = inlined_call_operand.<no memory space> [shape: f32[1,1], index: 6, kind: input, shape index: {}]   ;;  %s416_s4 = inlined_call_operand.vmem [shape: f32[1,32], index: 4, kind: input, shape index: {}]   ;;  %s417_s5 = inlined_call_operand.vmem [shape: f32[1,32], index: 5, kind: input, shape index: {}]   ;;  %s418_s7 = inlined_call_operand.vmem [shape: f32[8,1], index: 7, kind: output, shape index: {}]  }
   0x1   :  { %287 = vmatprep.subr.bf16.mxu0 %v312_v0  ;;  %v29_v1 = vld [vmem:[%s411_s1] sm:$0xff]  ;;  %v30_v2 = vld [vmem:[%s411_s1 + $0x8] sm:$0xff]  ;;  %v31_v3 = vld [vmem:[%s411_s1 + $0x10] sm:$0xff]  ;;  %265 = vmatprep.mubr.msk.f32.mxu0 %vm313_vm0, %v314_v4  ;;  %vm130_vm2 = vcmask 523264   ;;  %v12_v26 = vstv %s415_s6  ;;  %vm230_vm3 = vcmask 7168  }
   0x2   :  { %v288_v5 = vpack.c.bf16 %v30_v2, %v29_v1  ;;  %v32_v6 = vld [vmem:[%s411_s1 + $0x18] sm:$0xff]  ;;  %293 = vmatprep.subr.bf16.mxu1 %v312_v0  ;;  %v115_v7 = vld [vmem:[%s412_s3] sm:$0xff]  ;;  %284 = vmatprep.mubr.msk.f32.mxu1 %vm313_vm0, %v314_v4  ;;  %v116_v8 = vld [vmem:[%s412_s3 + $0x8] sm:$0xff]  ;;  %13 = vst [vmem:[#allocation2] sm:$0x1] %v12_v26 }
   0x3   :  { %v117_v9 = vld [vmem:[%s412_s3 + $0x10] sm:$0xff]  ;;  %v118_v10 = vld [vmem:[%s412_s3 + $0x18] sm:$0xff]  ;;  %v291_v11 = vpack.c.bf16 %v32_v6, %v31_v3  ;;  %v294_v12 = vpack.c.bf16 %v116_v8, %v115_v7  ;;  %v119_v14 = vld [vmem:[%s412_s3 + $0x20] sm:$0xff] }
   0x4   :  { %289 = vmatpush3.bf16.msra.mxu0 %v288_v5  ;;  %v297_v13 = vpack.c.bf16 %v118_v10, %v117_v9  ;;  %v120_v15 = vld [vmem:[%s412_s3 + $0x28] sm:$0xff]  ;;  %v28_v16 = vld [vmem:[%s413_s0] sm:$0xff]  ;;  %v121_v18 = vld [vmem:[%s412_s3 + $0x30] sm:$0xff] }
   0x5   :  { %290 = vmatprep.subr.bf16.mxu0 %v312_v0  ;;  %295 = vmatpush3.bf16.msra.mxu1 %v294_v12  ;;  %v300_v17 = vpack.c.bf16 %v120_v15, %v119_v14  ;;  %v122_v19 = vld [vmem:[%s412_s3 + $0x38] sm:$0xff]  ;;  %v236_v21 = vld [vmem:[%s414_s2] ss:$0 sm:$0xff] }
   0x6   :  { %296 = vmatprep.subr.bf16.mxu1 %v312_v0  ;;  %v303_v20 = vpack.c.bf16 %v122_v19, %v121_v18  ;;  %v238_v27 = vld [vmem:[%s416_s4] ss:$0 sm:$0xff] }
   0x7   :  { %v240_v31 = vld [vmem:[%s417_s5] ss:$0 sm:$0xff] }
   0x8   :  { %292 = vmatpush3.bf16.msra.mxu0 %v291_v11 }
   0x9   :  { %298 = vmatpush3.bf16.msra.mxu1 %v297_v13  ;;  %v241_v35 = vld [vmem:[#allocation2] ss:$0 sm:$0xff] }
   0xa   :  { %299 = vmatprep.subr.bf16.mxu1 %v312_v0 }
   0xb   :  { %266 = vmatmul.mubr.msk.f32.vlgmr.msra.gmra.mrb[0].mxu0 %vm40_vm1, %v28_v16 }
   0xd   :  { %301 = vmatpush3.bf16.msra.mxu1 %v300_v17 }
   0xe   :  { %302 = vmatprep.subr.bf16.mxu1 %v312_v0 }
  0x11   :  { %304 = vmatpush3.bf16.msra.mxu1 %v303_v20 }
  0xde   :  { %v110_v22 = vpop.f32.mrb[0].mxu0 }
  0xdf   :  { %v111_v23 = vadd.f32 %v236_v21, %v110_v22  ;;  %v267_v24 = vpop.f32.mrb[1].mxu0 }
  0xe1   :  { %v114_v25 = vmax.f32 %v111_v23, 0.0 }
  0xe3   :  { %285 = vmatmul.mubr.msk.f32.vlgmr.msra.gmra.mrb[0].mxu1 %vm130_vm2, %v114_v25 }
 0x1b6   :  { %v200_v28 = vpop.f32.mrb[0].mxu1 }
 0x1b7   :  { %v201_v29 = vadd.f32 %v238_v27, %v200_v28  ;;  %v286_v30 = vpop.f32.mrb[1].mxu1 }
 0x1b9   :  { %v204_v32 = vmax.f32 %v201_v29, 0.0 }
 0x1bb   :  { %v212_v33 = vmul.f32 %v240_v31, %v204_v32 }
 0x1bd   :  { %v213_v34 = vsel %vm40_vm1, %v212_v33, 0.0 }
 0x1be   :  { %214 = vadd.xlane.f32.xlu0 %v213_v34 }
 0x24b   :  { %v215_v36 = vpop.xlane.xlu0 %214 }
 0x24c   :  { %v223_v37 = vadd.f32 %v241_v35, %v215_v36 }
 0x24e   :  { %v242_v38 = vmul.f32 -1.442695, %v223_v37 }
 0x250   :  { %308 = vpow2.f32 %v242_v38 }
 0x25a   :  { %v309_v39 = vpop.eup %308 }
 0x25b   :  { %v227_v40 = vadd.f32 1.0, %v309_v39 }
 0x25d   :  { %310 = vrcp.f32 %v227_v40 }
 0x267   :  { %v311_v41 = vpop.eup %310 }
 0x268   :  { %231 = vst.msk [vmem:[%s418_s7] sm:$0xff] %vm230_vm3, %v311_v41 }

</bundles_post_ra>
